<compile_context>
chip_gen: v5e
topology: v5e:2x2
jax: 0.10.0
libtpu: 0.0.40
codegen_flags: <defaults>
</compile_context>

<pallas_src>
import functools

import jax
import jax.numpy as jnp
from jax import lax
from jax.experimental import pallas as pl
from jax.experimental.pallas import tpu as pltpu


# --------------------------------------------------------------------------------------
# Kernel: all conv layers fused, activations stay on-core, one MXU matmul per layer.
# --------------------------------------------------------------------------------------
def _fused_cnn_kernel(x_ref, w_ref, b_ref, a_ref, o_ref, *, n_layers, H, WC, mxu_dtype):
    """x_ref : (1, H, WC)      one image, W-folded, channel-padded, no spatial halo
       w_ref : (L, WC, 3*WC)   per-layer folded conv weights (bf16 by default)
       b_ref : (L, WC)         per-layer bias tiled along W
       a_ref : (L, WC)         per-layer PReLU slope broadcast along lanes
       o_ref : (1, H, WC)      folded output (same lane layout as input)
    """
    zrow = jnp.zeros((1, WC), jnp.float32)
    cur = x_ref[0]                                            # (H, WC) f32

    for l in range(n_layers):                                 # static unroll (few layers)
        is_last = l == n_layers - 1

        # One MXU matmul per layer: all 3 dx taps folded into the weight matrix,
        # one lane block per kernel row dy.  bf16 x bf16 -> f32 accumulate.
        full = jnp.dot(cur.astype(mxu_dtype), w_ref[l],
                       preferred_element_type=jnp.float32)    # (H, 3*WC)

        # dy combine: out[h] = full[h-1, dy0] + full[h, dy1] + full[h+1, dy2],
        # with zero rows at the H boundary (SAME padding).  Lane slices are 128-aligned.
        t0 = jnp.concatenate([zrow, full[0:H - 1, 0:WC]], axis=0)
        t1 = full[:, WC:2 * WC]
        t2 = jnp.concatenate([full[1:H, 2 * WC:3 * WC], zrow], axis=0)
        y = t0 + t1 + t2 + b_ref[l:l + 1, :]                  # bias: (1, WC) row broadcast

        if is_last:
            o_ref[0] = y                                      # full aligned (H, 128) store
        else:
            # Dropout is identity (inference); PReLU with lane-broadcast slope.
            cur = jnp.where(y > 0, y, a_ref[l:l + 1, :] * y)


# --------------------------------------------------------------------------------------
# Wrapper-side weight folding (pure XLA, tiny).
# --------------------------------------------------------------------------------------
def _fold_conv_weights(w_hwio, W, Cp):
    """(3,3,Cin,Cout) -> (W*Cp, 3*W*Cp) block-banded matrix for the W-folded layout.

    Entry [w_in*Cp + ci, dy*W*Cp + w_out*Cp + co] = w_hwio[dy, w_in - w_out + 1, ci, co],
    zero when |w_in - w_out| > 1 (out-of-range dx == implicit zero padding in W).
    Padded channels get zero weights, so channel padding is exact.
    """
    Cin, Cout = w_hwio.shape[2], w_hwio.shape[3]
    w_pad = jnp.zeros((3, 3, Cp, Cp), jnp.float32).at[:, :, :Cin, :Cout].set(w_hwio)
    blocks = []
    for dy in range(3):
        acc = jnp.zeros((W * Cp, W * Cp), jnp.float32)
        for dx in range(3):
            # S[w_in, w_out] = 1 iff w_in == w_out + dx - 1
            shift = jnp.eye(W, k=1 - dx, dtype=jnp.float32)
            acc = acc + jnp.kron(shift, w_pad[dy, dx])
        blocks.append(acc)
    return jnp.concatenate(blocks, axis=1)                     # (W*Cp, 3*W*Cp)


def cnn_forward(x_nchw, params, compute_dtype=jnp.bfloat16):
    """Forward pass of CNN; input/output NCHW to mirror PyTorch."""
    N, Cin, H, W = x_nchw.shape
    L = len(params)
    out_chan = params[-1][0].shape[-1]
    chans = [Cin] + [p[0].shape[-1] for p in params]
    Cp = max(chans)                      # common padded channel width
    WC = W * Cp

    # ---- layout prep (XLA, tiny) -----------------------------------------------------
    x_nhwc = jnp.transpose(x_nchw, (0, 2, 3, 1))
    x_cpad = jnp.pad(x_nhwc, ((0, 0), (0, 0), (0, 0), (0, Cp - Cin)))
    x3 = x_cpad.reshape(N, H, WC)                              # lanes = w*Cp + c

    w_fold = jnp.stack([_fold_conv_weights(w, W, Cp)
                        for (w, _, _) in params]).astype(compute_dtype)
    b_fold = jnp.stack([jnp.tile(jnp.pad(b, (0, Cp - b.shape[0])), W)
                        for (_, b, _) in params])
    a_fold = jnp.stack([jnp.broadcast_to(jnp.asarray(a, jnp.float32), (WC,))
                        for (_, _, a) in params])

    kernel = functools.partial(_fused_cnn_kernel, n_layers=L, H=H, WC=WC,
                               mxu_dtype=compute_dtype)

    flops = 2 * L * N * H * WC * (3 * WC)
    bytes_accessed = (x3.size * 4 + w_fold.size * w_fold.dtype.itemsize
                      + b_fold.size * 4 + a_fold.size * 4 + N * H * WC * 4)

    out3 = pl.pallas_call(
        kernel,
        out_shape=jax.ShapeDtypeStruct((N, H, WC), jnp.float32),
        grid_spec=pltpu.PrefetchScalarGridSpec(
            num_scalar_prefetch=0,
            grid=(N,),                                         # one image per grid step
            in_specs=[
                pl.BlockSpec((1, H, WC), lambda i: (i, 0, 0)),
                pl.BlockSpec((L, WC, 3 * WC), lambda i: (0, 0, 0)),  # VMEM-resident weights
                pl.BlockSpec((L, WC), lambda i: (0, 0)),
                pl.BlockSpec((L, WC), lambda i: (0, 0)),
            ],
            out_specs=pl.BlockSpec((1, H, WC), lambda i: (i, 0, 0)),
        ),
        compiler_params=pltpu.CompilerParams(
            dimension_semantics=("parallel",)),                # 2-TC sharding on v7x
        cost_estimate=pl.CostEstimate(flops=flops, transcendentals=0,
                                      bytes_accessed=bytes_accessed),
    )(x3, w_fold, b_fold, a_fold)

    out = out3.reshape(N, H, W, Cp)[..., :out_chan]
    return jnp.transpose(out, (0, 3, 1, 2))                    # NHWC -> NCHW


# --------------------------------------------------------------------------------------
# Parameters & reference.
# --------------------------------------------------------------------------------------
def init_cnn_params(key, in_chan, inter_chan_list, out_chan):
    """Deterministic parameter init matching the PyTorch module's shapes."""
    chans = [in_chan] + list(inter_chan_list) + [out_chan]
    params = []
    for i in range(len(chans) - 1):
        cin, cout = chans[i], chans[i + 1]
        key, kw, kb = jax.random.split(key, 3)
        fan_in = cin * 9
        scale = 1.0 / jnp.sqrt(jnp.asarray(fan_in, jnp.float32))
        w = jax.random.uniform(kw, (3, 3, cin, cout), jnp.float32,
                               minval=-scale, maxval=scale)
        b = jax.random.uniform(kb, (cout,), jnp.float32,
                               minval=-scale, maxval=scale)
        alpha = jnp.asarray(0.25, jnp.float32)  # nn.PReLU() default (unused on last layer)
        params.append((w, b, alpha))
    return params


def _reference_forward(x_nchw, params):
    """Pure-JAX reference (lax.conv, f32) for a correctness sanity check."""
    x = jnp.transpose(x_nchw, (0, 2, 3, 1))
    n_layers = len(params)
    for li, (w, b, alpha) in enumerate(params):
        y = lax.conv_general_dilated(
            x, w, window_strides=(1, 1), padding="SAME",
            dimension_numbers=("NHWC", "HWIO", "NHWC"))
        y = y + b
        if li != n_layers - 1:
            y = jnp.where(y > 0, y, alpha * y)
        x = y
    return jnp.transpose(x, (0, 3, 1, 2))


if __name__ == "__main__":
    key = jax.random.PRNGKey(0)
    kx, kp = jax.random.split(key)

    # Small shapes consistent with the module: NCHW input.
    N, Cin, H, W = 2, 4, 16, 16
    inter_chan_list = [8, 8]
    out_chan = 2

    x = jax.random.normal(kx, (N, Cin, H, W), jnp.float32)
    params = init_cnn_params(kp, Cin, inter_chan_list, out_chan)

    fwd = jax.jit(cnn_forward)
    out = jax.block_until_ready(fwd(x, params))

    ref = _reference_forward(x, params)
    assert out.shape == (N, out_chan, H, W)
    # Tolerance loosened vs. the pure-f32 reference: weights/activations enter the MXU
    # in bfloat16 (f32 accumulation), per the v6e/v7x performance guidance.
    assert jnp.allclose(out, ref, atol=5e-2, rtol=5e-2), \
        float(jnp.max(jnp.abs(out - ref)))

    print("KERNEL_OK")
</pallas_src>

<mosaic_0001>
module attributes {stable_mosaic.version = 11 : i64} {
  func.func @_fused_cnn_kernel(%arg0: i32, %arg1: memref<1x16x128xf32, #tpu.memory_space<vmem>>, %arg2: memref<3x128x384xbf16, #tpu.memory_space<vmem>>, %arg3: memref<3x128xf32, #tpu.memory_space<vmem>>, %arg4: memref<3x128xf32, #tpu.memory_space<vmem>>, %arg5: memref<1x16x128xf32, #tpu.memory_space<vmem>>) attributes {dimension_semantics = [#tpu.dimension_semantics<parallel>], iteration_bounds = array<i64: 2>, scalar_prefetch = 0 : i64, scratch_operands = 0 : i64, tpu.core_type = #tpu.core_type<tc>, window_params = [{transform_indices = @transform_0, window_bounds = array<i64: 1, 16, 128>}, {pipeline_mode = #tpu.pipeline_mode<synchronous>, transform_indices = @transform_1, window_bounds = array<i64: 3, 128, 384>}, {pipeline_mode = #tpu.pipeline_mode<synchronous>, transform_indices = @transform_2, window_bounds = array<i64: 3, 128>}, {pipeline_mode = #tpu.pipeline_mode<synchronous>, transform_indices = @transform_3, window_bounds = array<i64: 3, 128>}, {transform_indices = @transform_4, window_bounds = array<i64: 1, 16, 128>}]} {
    %cst = arith.constant 0.000000e+00 : f32
    %0 = vector.broadcast %cst : f32 to vector<1x128xf32>
    %c0 = arith.constant 0 : index
    %c0_0 = arith.constant 0 : index
    %c0_1 = arith.constant 0 : index
    %1 = vector.load %arg1[%c0, %c0_0, %c0_1] : memref<1x16x128xf32, #tpu.memory_space<vmem>>, vector<1x16x128xf32>
    %2 = vector.shape_cast %1 : vector<1x16x128xf32> to vector<16x128xf32>
    %3 = arith.truncf %2 : vector<16x128xf32> to vector<16x128xbf16>
    %c0_2 = arith.constant 0 : index
    %c0_3 = arith.constant 0 : index
    %c0_4 = arith.constant 0 : index
    %4 = vector.load %arg2[%c0_2, %c0_3, %c0_4] : memref<3x128x384xbf16, #tpu.memory_space<vmem>>, vector<1x128x384xbf16>
    %5 = vector.shape_cast %4 : vector<1x128x384xbf16> to vector<128x384xbf16>
    %cst_5 = arith.constant dense<0.000000e+00> : vector<16x384xf32>
    %6 = tpu.matmul %3, %5, %cst_5 {dimension_numbers = #tpu.dot_dimension_numbers<[1], [0], [0], [1], [0, 0, 1, 1], [], []>} : vector<16x128xbf16>, vector<128x384xbf16>, vector<16x384xf32> -> vector<16x384xf32>
    %7 = vector.extract_strided_slice %6 {offsets = [0, 0], sizes = [15, 128], strides = [1, 1]} : vector<16x384xf32> to vector<15x128xf32>
    %8 = tpu.concatenate %0, %7 in 0 : vector<1x128xf32>, vector<15x128xf32> -> vector<16x128xf32>
    %9 = vector.extract_strided_slice %6 {offsets = [0, 128], sizes = [16, 128], strides = [1, 1]} : vector<16x384xf32> to vector<16x128xf32>
    %10 = vector.extract_strided_slice %6 {offsets = [1, 256], sizes = [15, 128], strides = [1, 1]} : vector<16x384xf32> to vector<15x128xf32>
    %11 = tpu.concatenate %10, %0 in 0 : vector<15x128xf32>, vector<1x128xf32> -> vector<16x128xf32>
    %12 = arith.addf %8, %9 : vector<16x128xf32>
    %13 = arith.addf %12, %11 : vector<16x128xf32>
    %c0_6 = arith.constant 0 : index
    %c0_7 = arith.constant 0 : index
    %14 = vector.load %arg3[%c0_6, %c0_7] : memref<3x128xf32, #tpu.memory_space<vmem>>, vector<1x128xf32>
    %15 = vector.broadcast %14 : vector<1x128xf32> to vector<16x128xf32>
    %16 = arith.addf %13, %15 : vector<16x128xf32>
    %cst_8 = arith.constant 0.000000e+00 : f32
    %17 = vector.broadcast %cst_8 : f32 to vector<16x128xf32>
    %18 = arith.cmpf ogt, %16, %17 : vector<16x128xf32>
    %c0_9 = arith.constant 0 : index
    %c0_10 = arith.constant 0 : index
    %19 = vector.load %arg4[%c0_9, %c0_10] : memref<3x128xf32, #tpu.memory_space<vmem>>, vector<1x128xf32>
    %20 = vector.broadcast %19 : vector<1x128xf32> to vector<16x128xf32>
    %21 = arith.mulf %20, %16 : vector<16x128xf32>
    %22 = arith.select %18, %16, %21 : vector<16x128xi1>, vector<16x128xf32>
    %23 = arith.truncf %22 : vector<16x128xf32> to vector<16x128xbf16>
    %c1 = arith.constant 1 : index
    %c0_11 = arith.constant 0 : index
    %c0_12 = arith.constant 0 : index
    %24 = vector.load %arg2[%c1, %c0_11, %c0_12] : memref<3x128x384xbf16, #tpu.memory_space<vmem>>, vector<1x128x384xbf16>
    %25 = vector.shape_cast %24 : vector<1x128x384xbf16> to vector<128x384xbf16>
    %cst_13 = arith.constant dense<0.000000e+00> : vector<16x384xf32>
    %26 = tpu.matmul %23, %25, %cst_13 {dimension_numbers = #tpu.dot_dimension_numbers<[1], [0], [0], [1], [0, 0, 1, 1], [], []>} : vector<16x128xbf16>, vector<128x384xbf16>, vector<16x384xf32> -> vector<16x384xf32>
    %27 = vector.extract_strided_slice %26 {offsets = [0, 0], sizes = [15, 128], strides = [1, 1]} : vector<16x384xf32> to vector<15x128xf32>
    %28 = tpu.concatenate %0, %27 in 0 : vector<1x128xf32>, vector<15x128xf32> -> vector<16x128xf32>
    %29 = vector.extract_strided_slice %26 {offsets = [0, 128], sizes = [16, 128], strides = [1, 1]} : vector<16x384xf32> to vector<16x128xf32>
    %30 = vector.extract_strided_slice %26 {offsets = [1, 256], sizes = [15, 128], strides = [1, 1]} : vector<16x384xf32> to vector<15x128xf32>
    %31 = tpu.concatenate %30, %0 in 0 : vector<15x128xf32>, vector<1x128xf32> -> vector<16x128xf32>
    %32 = arith.addf %28, %29 : vector<16x128xf32>
    %33 = arith.addf %32, %31 : vector<16x128xf32>
    %c1_14 = arith.constant 1 : index
    %c0_15 = arith.constant 0 : index
    %34 = vector.load %arg3[%c1_14, %c0_15] : memref<3x128xf32, #tpu.memory_space<vmem>>, vector<1x128xf32>
    %35 = vector.broadcast %34 : vector<1x128xf32> to vector<16x128xf32>
    %36 = arith.addf %33, %35 : vector<16x128xf32>
    %cst_16 = arith.constant 0.000000e+00 : f32
    %37 = vector.broadcast %cst_16 : f32 to vector<16x128xf32>
    %38 = arith.cmpf ogt, %36, %37 : vector<16x128xf32>
    %c1_17 = arith.constant 1 : index
    %c0_18 = arith.constant 0 : index
    %39 = vector.load %arg4[%c1_17, %c0_18] : memref<3x128xf32, #tpu.memory_space<vmem>>, vector<1x128xf32>
    %40 = vector.broadcast %39 : vector<1x128xf32> to vector<16x128xf32>
    %41 = arith.mulf %40, %36 : vector<16x128xf32>
    %42 = arith.select %38, %36, %41 : vector<16x128xi1>, vector<16x128xf32>
    %43 = arith.truncf %42 : vector<16x128xf32> to vector<16x128xbf16>
    %c2 = arith.constant 2 : index
    %c0_19 = arith.constant 0 : index
    %c0_20 = arith.constant 0 : index
    %44 = vector.load %arg2[%c2, %c0_19, %c0_20] : memref<3x128x384xbf16, #tpu.memory_space<vmem>>, vector<1x128x384xbf16>
    %45 = vector.shape_cast %44 : vector<1x128x384xbf16> to vector<128x384xbf16>
    %cst_21 = arith.constant dense<0.000000e+00> : vector<16x384xf32>
    %46 = tpu.matmul %43, %45, %cst_21 {dimension_numbers = #tpu.dot_dimension_numbers<[1], [0], [0], [1], [0, 0, 1, 1], [], []>} : vector<16x128xbf16>, vector<128x384xbf16>, vector<16x384xf32> -> vector<16x384xf32>
    %47 = vector.extract_strided_slice %46 {offsets = [0, 0], sizes = [15, 128], strides = [1, 1]} : vector<16x384xf32> to vector<15x128xf32>
    %48 = tpu.concatenate %0, %47 in 0 : vector<1x128xf32>, vector<15x128xf32> -> vector<16x128xf32>
    %49 = vector.extract_strided_slice %46 {offsets = [0, 128], sizes = [16, 128], strides = [1, 1]} : vector<16x384xf32> to vector<16x128xf32>
    %50 = vector.extract_strided_slice %46 {offsets = [1, 256], sizes = [15, 128], strides = [1, 1]} : vector<16x384xf32> to vector<15x128xf32>
    %51 = tpu.concatenate %50, %0 in 0 : vector<15x128xf32>, vector<1x128xf32> -> vector<16x128xf32>
    %52 = arith.addf %48, %49 : vector<16x128xf32>
    %53 = arith.addf %52, %51 : vector<16x128xf32>
    %c2_22 = arith.constant 2 : index
    %c0_23 = arith.constant 0 : index
    %54 = vector.load %arg3[%c2_22, %c0_23] : memref<3x128xf32, #tpu.memory_space<vmem>>, vector<1x128xf32>
    %55 = vector.broadcast %54 : vector<1x128xf32> to vector<16x128xf32>
    %56 = arith.addf %53, %55 : vector<16x128xf32>
    %c0_24 = arith.constant 0 : index
    %c0_25 = arith.constant 0 : index
    %c0_26 = arith.constant 0 : index
    %57 = vector.load %arg5[%c0_24, %c0_25, %c0_26] : memref<1x16x128xf32, #tpu.memory_space<vmem>>, vector<1x16x128xf32>
    %58 = vector.shape_cast %57 : vector<1x16x128xf32> to vector<16x128xf32>
    %59 = vector.shape_cast %56 : vector<16x128xf32> to vector<1x16x128xf32>
    tpu.vector_store %arg5[%c0_24, %c0_25, %c0_26], %59 {strides = array<i32>} : memref<1x16x128xf32, #tpu.memory_space<vmem>>, vector<1x16x128xf32>,
    return
  }
  func.func @transform_0(%arg0: i32) -> (i32, i32, i32) {
    %c0_i32 = arith.constant 0 : i32
    %c0_i32_0 = arith.constant 0 : i32
    %c0_i32_1 = arith.constant 0 : i32
    return %arg0, %c0_i32, %c0_i32_0 : i32, i32, i32
  }
  func.func @transform_1(%arg0: i32) -> (i32, i32, i32) {
    %c0_i32 = arith.constant 0 : i32
    %c0_i32_0 = arith.constant 0 : i32
    %c0_i32_1 = arith.constant 0 : i32
    %c0_i32_2 = arith.constant 0 : i32
    return %c0_i32, %c0_i32_0, %c0_i32_1 : i32, i32, i32
  }
  func.func @transform_2(%arg0: i32) -> (i32, i32) {
    %c0_i32 = arith.constant 0 : i32
    %c0_i32_0 = arith.constant 0 : i32
    %c0_i32_1 = arith.constant 0 : i32
    return %c0_i32, %c0_i32_0 : i32, i32
  }
  func.func @transform_3(%arg0: i32) -> (i32, i32) {
    %c0_i32 = arith.constant 0 : i32
    %c0_i32_0 = arith.constant 0 : i32
    %c0_i32_1 = arith.constant 0 : i32
    return %c0_i32, %c0_i32_0 : i32, i32
  }
  func.func @transform_4(%arg0: i32) -> (i32, i32, i32) {
    %c0_i32 = arith.constant 0 : i32
    %c0_i32_0 = arith.constant 0 : i32
    %c0_i32_1 = arith.constant 0 : i32
    return %arg0, %c0_i32, %c0_i32_0 : i32, i32, i32
  }
}

</mosaic_0001>

<bundles_post_ra>
// kernel: tile.26
= control target key start
LH: loop header
LB: loop body
LE: loop exit
PB: predicated region body
PF: predicated region fallthrough
CT: control target
= control target key end

     0   :  { %s28_s0 = inlined_call_operand.vmem [shape: f32[8], index: 0, kind: input, shape index: {}]   ;;  %s29_s1 = inlined_call_operand.vmem [shape: f32[16,8], index: 1, kind: output, shape index: {}]  }
   0x1   :  { %v4_v0 = vld [vmem:[%s28_s0] ss:$0 sm:$0xff] }
   0x2   :  { %5 = vst [vmem:[%s29_s1] sm:$0xff] %v4_v0 }
   0x3   :  { %8 = vst [vmem:[%s29_s1 + $0x8] sm:$0xff] %v4_v0 }

// kernel: tile.29
= control target key start
LH: loop header
LB: loop body
LE: loop exit
PB: predicated region body
PF: predicated region fallthrough
CT: control target
= control target key end

     0   :  { %s131_s10 = smov 120   ;;  %s132_s11 = smov 104   ;;  %vm3_vm0 = vcmask 64512   ;;  %vm9_vm1 = vcmask 1048512   ;;  %vm15_vm2 = vcmask 982912   ;;  %vm21_vm3 = vcmask 917312   ;;  %s207_s0 = inlined_call_operand.vmem [shape: f32[16,8], index: 0, kind: input, shape index: {}]   ;;  %s208_s1 = inlined_call_operand.vmem [shape: f32[1,128], index: 1, kind: output, shape index: {}]  }
   0x1   :  { %v101_v0 = vld [vmem:[%s207_s0 + $0xf] sm:$0x1]   ;;  %v103_v1 = vld [vmem:[%s207_s0 + $0xd] sm:$0x1]   ;;  %v105_v2 = vld [vmem:[%s207_s0 + $0xb] sm:$0x1]  }
   0x2   :  { %7 = vrot.lane.b32.xlu0 %v101_v0, %s131_s10  ;;  %19 = vrot.lane.b32.xlu1 %v103_v1, %s132_s11  ;;  %s133_s14 = smov 88   ;;  %v102_v3 = vld [vmem:[%s207_s0 + $0xe] sm:$0x1]   ;;  %v104_v4 = vld [vmem:[%s207_s0 + $0xc] sm:$0x1]   ;;  %s134_s19 = smov 112  }
   0x3   :  { %31 = vrot.lane.b32.xlu2 %v105_v2, %s133_s14  ;;  %s135_s20 = smov 96   ;;  %v106_v5 = vld [vmem:[%s207_s0 + $0xa] sm:$0x1]   ;;  %s136_s23 = smov 80   ;;  %v107_v6 = vld [vmem:[%s207_s0 + $0x9] sm:$0x1]  }
   0x4   :  { %v108_v7 = vld [vmem:[%s207_s0 + $0x8] sm:$0x1]   ;;  %s137_s28 = smov 72   ;;  %s138_s29 = smov 64   ;;  %v109_v8 = vld [vmem:[%s207_s0 + $0x7] sm:$0x1]  }
   0x5   :  { %s139_s3 = smov 56   ;;  %v110_v9 = vld [vmem:[%s207_s0 + $0x6] sm:$0x1]   ;;  %v111_v10 = vld [vmem:[%s207_s0 + $0x5] sm:$0x1]   ;;  %s140_s8 = smov 48  }
   0x6   :  { %s141_s9 = smov 40   ;;  %v112_v11 = vld [vmem:[%s207_s0 + $0x4] sm:$0x1]   ;;  %s142_s12 = smov 32   ;;  %v113_v12 = vld [vmem:[%s207_s0 + $0x3] sm:$0x1]  }
   0x7   :  { %v114_v13 = vld [vmem:[%s207_s0 + $0x2] sm:$0x1]   ;;  %s143_s17 = smov 24   ;;  %s144_s18 = smov 16   ;;  %v115_v14 = vld [vmem:[%s207_s0 + $0x1] sm:$0x1]  }
   0x8   :  { %s145_s21 = smov 8   ;;  %v2_v15 = vld [vmem:[%s207_s0] sm:$0x1]   ;;  %vm27_vm4 = vcmask 851712   ;;  %vm33_vm5 = vcmask 786112   ;;  %vm39_vm6 = vcmask 720512  }
   0x9   :  { %4 = vst.msk [vmem:[#allocation0] sm:$0x1] %vm3_vm0, %v2_v15   ;;  %vm45_vm7 = vcmask 654912   ;;  %vm51_vm8 = vcmask 589312   ;;  %vm57_vm9 = vcmask 523712   ;;  %vm63_vm10 = vcmask 458112  }
   0xa   :  { %13 = vrot.lane.b32.xlu0 %v102_v3, %s134_s19  ;;  %25 = vrot.lane.b32.xlu1 %v104_v4, %s135_s20  ;;  %vm69_vm11 = vcmask 392512   ;;  %vm75_vm12 = vcmask 326912   ;;  %vm81_vm13 = vcmask 261312   ;;  %vm87_vm14 = vcmask 195712  }
   0xb   :  { %37 = vrot.lane.b32.xlu2 %v106_v5, %s136_s23  ;;  %vm93_vm15 = vcmask 130112  }
  0x12   :  { %43 = vrot.lane.b32.xlu0 %v107_v6, %s137_s28  ;;  %49 = vrot.lane.b32.xlu1 %v108_v7, %s138_s29 }
  0x13   :  { %55 = vrot.lane.b32.xlu2 %v109_v8, %s139_s3 }
  0x1a   :  { %61 = vrot.lane.b32.xlu0 %v110_v9, %s140_s8  ;;  %67 = vrot.lane.b32.xlu1 %v111_v10, %s141_s9 }
  0x1b   :  { %73 = vrot.lane.b32.xlu2 %v112_v11, %s142_s12 }
  0x22   :  { %79 = vrot.lane.b32.xlu0 %v113_v12, %s143_s17  ;;  %85 = vrot.lane.b32.xlu1 %v114_v13, %s144_s18 }
  0x23   :  { %91 = vrot.lane.b32.xlu2 %v115_v14, %s145_s21 }
  0x5d   :  { %v32_v16 = vpop.permute.xlu2 %31  }
  0x65   :  { %v38_v17 = vpop.permute.xlu2 %37  }
  0x6d   :  { %v56_v18 = vpop.permute.xlu2 %55  }
  0x74   :  { %v8_v19 = vpop.permute.xlu0 %7   ;;  %v20_v20 = vpop.permute.xlu1 %19  }
  0x75   :  { %10 = vst.msk [vmem:[#allocation0] sm:$0x1] %vm9_vm1, %v8_v19   ;;  %v74_v21 = vpop.permute.xlu2 %73  }
  0x7c   :  { %v14_v22 = vpop.permute.xlu0 %13   ;;  %v26_v23 = vpop.permute.xlu1 %25  }
  0x7d   :  { %16 = vst.msk [vmem:[#allocation0] sm:$0x1] %vm15_vm2, %v14_v22   ;;  %v92_v24 = vpop.permute.xlu2 %91  }
  0x7e   :  { %22 = vst.msk [vmem:[#allocation0] sm:$0x1] %vm21_vm3, %v20_v20  }
  0x7f   :  { %28 = vst.msk [vmem:[#allocation0] sm:$0x1] %vm27_vm4, %v26_v23  }
  0x80   :  { %34 = vst.msk [vmem:[#allocation0] sm:$0x1] %vm33_vm5, %v32_v16  }
  0x81   :  { %40 = vst.msk [vmem:[#allocation0] sm:$0x1] %vm39_vm6, %v38_v17  }
  0x84   :  { %v44_v25 = vpop.permute.xlu0 %43   ;;  %v50_v26 = vpop.permute.xlu1 %49  }
  0x85   :  { %46 = vst.msk [vmem:[#allocation0] sm:$0x1] %vm45_vm7, %v44_v25  }
  0x86   :  { %52 = vst.msk [vmem:[#allocation0] sm:$0x1] %vm51_vm8, %v50_v26  }
  0x87   :  { %58 = vst.msk [vmem:[#allocation0] sm:$0x1] %vm57_vm9, %v56_v18  }
  0x8c   :  { %v62_v27 = vpop.permute.xlu0 %61   ;;  %v68_v28 = vpop.permute.xlu1 %67  }
  0x8d   :  { %64 = vst.msk [vmem:[#allocation0] sm:$0x1] %vm63_vm10, %v62_v27  }
  0x8e   :  { %70 = vst.msk [vmem:[#allocation0] sm:$0x1] %vm69_vm11, %v68_v28  }
  0x8f   :  { %76 = vst.msk [vmem:[#allocation0] sm:$0x1] %vm75_vm12, %v74_v21  }
  0x94   :  { %v80_v29 = vpop.permute.xlu0 %79   ;;  %v86_v30 = vpop.permute.xlu1 %85  }
  0x95   :  { %82 = vst.msk [vmem:[#allocation0] sm:$0x1] %vm81_vm13, %v80_v29  }
  0x96   :  { %88 = vst.msk [vmem:[#allocation0] sm:$0x1] %vm87_vm14, %v86_v30  }
  0x97   :  { %94 = vst.msk [vmem:[#allocation0] sm:$0x1] %vm93_vm15, %v92_v24  }
  0x9e   :  { %v97_v31 = vld [vmem:[#allocation0] sm:$0x1] }
  0x9f   :  { %100 = vst [vmem:[%s208_s1] sm:$0x1] %v97_v31 }

// kernel: cnn_forward.1
= control target key start
LH: loop header
LB: loop body
LE: loop exit
PB: predicated region body
PF: predicated region fallthrough
CT: control target
= control target key end

     0   :  { %s1441_s15 = smov 0   ;;  %s1928_s0 = inlined_call_operand.vmem [shape: f32[2,16,128], index: 0, kind: input, shape index: {}]   ;;  %s1929_s1 = inlined_call_operand.vmem [shape: bf16[3,128,384], index: 1, kind: input, shape index: {}]   ;;  %s1930_s2 = inlined_call_operand.vmem [shape: f32[3,128], index: 2, kind: input, shape index: {}]   ;;  %s1931_s3 = inlined_call_operand.vmem [shape: f32[3,128], index: 3, kind: input, shape index: {}]   ;;  %s1932_s4 = inlined_call_operand.vmem [shape: f32[2,16,128], index: 4, kind: output, shape index: {}]  }
   0x1 LB: > { %s958_s16 = sadd.s32 4294967295, %s1414_s15   ;;  %p962_p0 = scmp.ge.s32.totalorder %s1414_s15, 1  ;;  %s1414_s15 = sphi %s1441_s15, %s14_s15  }
   0x2   : > { %p162_p1 = scmp.lt.s32.totalorder %s1414_s15, 3 }
   0x4   : > { %p163_p2 = pnand %p962_p0, %p162_p1 }
   0x5   : > { %p188_p3 = scmp.lt.s32.totalorder (!%p163_p2), %s958_s16, 1 }
   0x6   : > { %166 = sbr.rel (%p163_p2) target bundleno = 503 (0x1f7), region = 36 }
   0xb   : > { %v1053_v0 = vld [vmem:[%s1929_s1 + $0xa8] sm:$0xf]  ;;  %v1345_v1 = vld [vmem:[%s1929_s1 + $0xb0] sm:$0xf0]  ;;  %v1344_v2 = vld [vmem:[%s1929_s1 + $0xac] sm:$0xf] }
   0xc   : > { %v1054_v3 = vor.u32 %v1345_v1, %v1053_v0  ;;  %v1055_v4 = vld [vmem:[%s1929_s1 + $0xb4] sm:$0xf0]  ;;  %v1061_v5 = vld [vmem:[%s1929_s1 + $0xb0] sm:$0xf]  ;;  %v1346_v6 = vld [vmem:[%s1929_s1 + $0xb8] sm:$0xf0] }
   0xd   : > { %v1058_v7 = vor.u32 %v1344_v2, %v1055_v4  ;;  %v1062_v8 = vor.u32 %v1346_v6, %v1061_v5  ;;  %v1041_v9 = vld [vmem:[%s1929_s1 + $0x90] sm:$0xf]  ;;  %v1342_v10 = vld [vmem:[%s1929_s1 + $0x98] sm:$0xf0]  ;;  %v1341_v11 = vld [vmem:[%s1929_s1 + $0x94] sm:$0xf] }
   0xe   : > { %361 = vmatpush.bf16.msra.mxu0 %v1054_v3  ;;  %v1042_v12 = vor.u32 %v1342_v10, %v1041_v9  ;;  %v1043_v13 = vld [vmem:[%s1929_s1 + $0x9c] sm:$0xf0]  ;;  %v1049_v14 = vld [vmem:[%s1929_s1 + $0x98] sm:$0xf]  ;;  %v1343_v15 = vld [vmem:[%s1929_s1 + $0xa0] sm:$0xf0] }
   0xf   : > { %375 = vmatpush.bf16.msra.mxu1 %v1058_v7  ;;  %389 = vmatpush.bf16.msra.mxu2 %v1062_v8  ;;  %v1046_v16 = vor.u32 %v1341_v11, %v1043_v13  ;;  %v1050_v17 = vor.u32 %v1343_v15, %v1049_v14  ;;  %v1029_v18 = vld [vmem:[%s1929_s1 + $0x78] sm:$0xf]  ;;  %v1339_v19 = vld [vmem:[%s1929_s1 + $0x80] sm:$0xf0]  ;;  %v1338_v20 = vld [vmem:[%s1929_s1 + $0x7c] sm:$0xf] }
  0x10   : > { %v1031_v21 = vld [vmem:[%s1929_s1 + $0x84] sm:$0xf0]  ;;  %v1037_v22 = vld [vmem:[%s1929_s1 + $0x80] sm:$0xf]  ;;  %v1340_v23 = vld [vmem:[%s1929_s1 + $0x88] sm:$0xf0]  ;;  %v1030_v24 = vor.u32 %v1339_v19, %v1029_v18 }
  0x11   : > { %v1034_v25 = vor.u32 %v1338_v20, %v1031_v21  ;;  %v1038_v26 = vor.u32 %v1340_v23, %v1037_v22  ;;  %v1017_v27 = vld [vmem:[%s1929_s1 + $0x60] sm:$0xf]  ;;  %v1336_v28 = vld [vmem:[%s1929_s1 + $0x68] sm:$0xf0]  ;;  %v1335_v29 = vld [vmem:[%s1929_s1 + $0x64] sm:$0xf] }
  0x12   : > { %362 = vmatpush.bf16.msra.mxu0 %v1042_v12  ;;  %v1019_v30 = vld [vmem:[%s1929_s1 + $0x6c] sm:$0xf0]  ;;  %v1025_v31 = vld [vmem:[%s1929_s1 + $0x68] sm:$0xf]  ;;  %v1337_v32 = vld [vmem:[%s1929_s1 + $0x70] sm:$0xf0]  ;;  %v1018_v33 = vor.u32 %v1336_v28, %v1017_v27 }
  0x13   : > { %376 = vmatpush.bf16.msra.mxu1 %v1046_v16  ;;  %390 = vmatpush.bf16.msra.mxu2 %v1050_v17  ;;  %v1022_v34 = vor.u32 %v1335_v29, %v1019_v30  ;;  %v1026_v35 = vor.u32 %v1337_v32, %v1025_v31  ;;  %v1005_v36 = vld [vmem:[%s1929_s1 + $0x48] sm:$0xf]  ;;  %v1333_v37 = vld [vmem:[%s1929_s1 + $0x50] sm:$0xf0]  ;;  %v1332_v38 = vld [vmem:[%s1929_s1 + $0x4c] sm:$0xf] }
  0x14   : > { %v1007_v39 = vld [vmem:[%s1929_s1 + $0x54] sm:$0xf0]  ;;  %v1013_v40 = vld [vmem:[%s1929_s1 + $0x50] sm:$0xf]  ;;  %v1334_v41 = vld [vmem:[%s1929_s1 + $0x58] sm:$0xf0]  ;;  %v1006_v42 = vor.u32 %v1333_v37, %v1005_v36 }
  0x15   : > { %v993_v43 = vld [vmem:[%s1929_s1 + $0x30] sm:$0xf]  ;;  %v1330_v44 = vld [vmem:[%s1929_s1 + $0x38] sm:$0xf0]  ;;  %v1329_v45 = vld [vmem:[%s1929_s1 + $0x34] sm:$0xf]  ;;  %v1010_v46 = vor.u32 %v1332_v38, %v1007_v39  ;;  %v1014_v47 = vor.u32 %v1334_v41, %v1013_v40 }
  0x16   : > { %363 = vmatpush.bf16.msra.mxu0 %v1030_v24  ;;  %v1181_v48 = vld [vmem:[%s1929_s1 + $0x168] sm:$0xf]  ;;  %v1369_v49 = vld [vmem:[%s1929_s1 + $0x170] sm:$0xf0]  ;;  %v995_v50 = vld [vmem:[%s1929_s1 + $0x3c] sm:$0xf0]  ;;  %v994_v56 = vor.u32 %v1330_v44, %v993_v43 }
  0x17   : > { %377 = vmatpush.bf16.msra.mxu1 %v1034_v25  ;;  %391 = vmatpush.bf16.msra.mxu2 %v1038_v26  ;;  %v1001_v51 = vld [vmem:[%s1929_s1 + $0x38] sm:$0xf]  ;;  %v1331_v52 = vld [vmem:[%s1929_s1 + $0x40] sm:$0xf0]  ;;  %v1182_v53 = vor.u32 %v1369_v49, %v1181_v48  ;;  %s1934_s16 = smov (!%p188_p3, %s958_s16), 1  ;;  %v998_v57 = vor.u32 %v1329_v45, %v995_v50  ;;  %vm405_vm0 = vcmask 1040384  }
  0x18   : > { %v981_v54 = vld [vmem:[%s1929_s1 + $0x18] sm:$0xf]  ;;  %v1327_v55 = vld [vmem:[%s1929_s1 + $0x20] sm:$0xf0]  ;;  %v1002_v58 = vor.u32 %v1331_v52, %v1001_v51  ;;  %v1326_v59 = vld [vmem:[%s1929_s1 + $0x1c] sm:$0xf] }
  0x19   : > { %599 = vmatpush.bf16.msra.mxu3 %v1182_v53  ;;  %v983_v60 = vld [vmem:[%s1929_s1 + $0x24] sm:$0xf0]  ;;  %v989_v61 = vld [vmem:[%s1929_s1 + $0x20] sm:$0xf]  ;;  %v1328_v62 = vld [vmem:[%s1929_s1 + $0x28] sm:$0xf0]  ;;  %v982_v63 = vor.u32 %v1327_v55, %v981_v54 }
  0x1a   : > { %364 = vmatpush.bf16.msra.mxu0 %v1018_v33  ;;  %s1321_s7 = sshll.u32 %s1934_s16, 4  ;;  %v969_v0 = vld [vmem:[%s1929_s1] sm:$0xf]  ;;  %v986_v1 = vor.u32 %v1326_v59, %v983_v60  ;;  %v990_v2 = vor.u32 %v1328_v62, %v989_v61  ;;  %v1324_v3 = vld [vmem:[%s1929_s1 + $0x8] sm:$0xf0]  ;;  %vm414_vm1 = vcmask 1046528  }
  0x1b   : > { %378 = vmatpush.bf16.msra.mxu1 %v1022_v34  ;;  %392 = vmatpush.bf16.msra.mxu2 %v1026_v35  ;;  %v1323_v4 = vld [vmem:[%s1929_s1 + $0x4] sm:$0xf]  ;;  %v971_v5 = vld [vmem:[%s1929_s1 + $0xc] sm:$0xf0]  ;;  %s192_s20 = scalar_lea.vmem %s1928_s0, %s1321_s7  ;;  %v977_v6 = vld [vmem:[%s1929_s1 + $0x8] sm:$0xf]  ;;  %v970_v12 = vor.u32 %v1324_v3, %v969_v0  ;;  %s197_s18 = scalar_lea.vmem %s1932_s4, %s1321_s7 }
  0x1c   : > { %v1325_v7 = vld [vmem:[%s1929_s1 + $0x10] sm:$0xf0]  ;;  %v1368_v8 = vld [vmem:[%s1929_s1 + $0x16c] sm:$0xf]  ;;  %v1183_v9 = vld [vmem:[%s1929_s1 + $0x174] sm:$0xf0]  ;;  %v974_v15 = vor.u32 %v1323_v4, %v971_v5 }
  0x1d   : > { %v1189_v10 = vld [vmem:[%s1929_s1 + $0x170] sm:$0xf]  ;;  %v1370_v11 = vld [vmem:[%s1929_s1 + $0x178] sm:$0xf0]  ;;  %v198_v13 = vld [vmem:[%s192_s20] sm:$0xff]  ;;  %v978_v16 = vor.u32 %v1325_v7, %v977_v6  ;;  %v1186_v17 = vor.u32 %v1368_v8, %v1183_v9 }
  0x1e   : > { %365 = vmatpush.bf16.msra.mxu0 %v1006_v42  ;;  %v199_v14 = vld [vmem:[%s192_s20 + $0x8] sm:$0xff]  ;;  %v1190_v18 = vor.u32 %v1370_v11, %v1189_v10  ;;  %v1169_v20 = vld [vmem:[%s1929_s1 + $0x150] sm:$0xf]  ;;  %v1366_v21 = vld [vmem:[%s1929_s1 + $0x158] sm:$0xf0] }
  0x1f   : > { %379 = vmatpush.bf16.msra.mxu1 %v1010_v46  ;;  %393 = vmatpush.bf16.msra.mxu2 %v1014_v47  ;;  %v200_v19 = vpack.c.bf16 %v199_v14, %v198_v13  ;;  %v1365_v22 = vld [vmem:[%s1929_s1 + $0x154] sm:$0xf]  ;;  %v1170_v23 = vor.u32 %v1366_v21, %v1169_v20  ;;  %v1171_v24 = vld [vmem:[%s1929_s1 + $0x15c] sm:$0xf0]  ;;  %v1177_v25 = vld [vmem:[%s1929_s1 + $0x158] sm:$0xf] }
  0x20   : > { %v1367_v26 = vld [vmem:[%s1929_s1 + $0x160] sm:$0xf0]  ;;  %v1174_v27 = vor.u32 %v1365_v22, %v1171_v24  ;;  %v1157_v29 = vld [vmem:[%s1929_s1 + $0x138] sm:$0xf]  ;;  %v1362_v31 = vld [vmem:[%s1929_s1 + $0x13c] sm:$0xf] }
  0x21   : > { %v1178_v28 = vor.u32 %v1367_v26, %v1177_v25  ;;  %600 = vmatpush.bf16.msra.mxu3 %v1170_v23  ;;  %v1363_v30 = vld [vmem:[%s1929_s1 + $0x140] sm:$0xf0]  ;;  %v1159_v33 = vld [vmem:[%s1929_s1 + $0x144] sm:$0xf0]  ;;  %v1165_v34 = vld [vmem:[%s1929_s1 + $0x140] sm:$0xf] }
  0x22   : > { %366 = vmatpush.bf16.msra.mxu0 %v994_v56  ;;  %v1158_v32 = vor.u32 %v1363_v30, %v1157_v29  ;;  %v1364_v35 = vld [vmem:[%s1929_s1 + $0x148] sm:$0xf0]  ;;  %v1162_v36 = vor.u32 %v1362_v31, %v1159_v33  ;;  %v1145_v38 = vld [vmem:[%s1929_s1 + $0x120] sm:$0xf]  ;;  %v1359_v40 = vld [vmem:[%s1929_s1 + $0x124] sm:$0xf] }
  0x23   : > { %380 = vmatpush.bf16.msra.mxu1 %v998_v57  ;;  %394 = vmatpush.bf16.msra.mxu2 %v1002_v58  ;;  %v1166_v37 = vor.u32 %v1364_v35, %v1165_v34  ;;  %v1360_v39 = vld [vmem:[%s1929_s1 + $0x128] sm:$0xf0]  ;;  %v1147_v42 = vld [vmem:[%s1929_s1 + $0x12c] sm:$0xf0]  ;;  %v1153_v43 = vld [vmem:[%s1929_s1 + $0x128] sm:$0xf] }
  0x24   : > { %v1146_v41 = vor.u32 %v1360_v39, %v1145_v38  ;;  %v1361_v44 = vld [vmem:[%s1929_s1 + $0x130] sm:$0xf0]  ;;  %v1150_v45 = vor.u32 %v1359_v40, %v1147_v42  ;;  %v1133_v47 = vld [vmem:[%s1929_s1 + $0x108] sm:$0xf]  ;;  %v1356_v49 = vld [vmem:[%s1929_s1 + $0x10c] sm:$0xf] }
  0x25   : > { %601 = vmatpush.bf16.msra.mxu3 %v1158_v32  ;;  %v1154_v46 = vor.u32 %v1361_v44, %v1153_v43  ;;  %v1357_v48 = vld [vmem:[%s1929_s1 + $0x110] sm:$0xf0]  ;;  %v1135_v51 = vld [vmem:[%s1929_s1 + $0x114] sm:$0xf0]  ;;  %v1141_v52 = vld [vmem:[%s1929_s1 + $0x110] sm:$0xf] }
  0x26   : > { %367 = vmatpush.bf16.msra.mxu0 %v982_v63  ;;  %v1134_v50 = vor.u32 %v1357_v48, %v1133_v47  ;;  %v1358_v53 = vld [vmem:[%s1929_s1 + $0x118] sm:$0xf0]  ;;  %v1138_v54 = vor.u32 %v1356_v49, %v1135_v51  ;;  %v1121_v56 = vld [vmem:[%s1929_s1 + $0xf0] sm:$0xf]  ;;  %v1353_v58 = vld [vmem:[%s1929_s1 + $0xf4] sm:$0xf] }
  0x27   : > { %381 = vmatpush.bf16.msra.mxu1 %v986_v1  ;;  %395 = vmatpush.bf16.msra.mxu2 %v990_v2  ;;  %v1142_v55 = vor.u32 %v1358_v53, %v1141_v52  ;;  %v1354_v57 = vld [vmem:[%s1929_s1 + $0xf8] sm:$0xf0]  ;;  %v1123_v60 = vld [vmem:[%s1929_s1 + $0xfc] sm:$0xf0]  ;;  %v1129_v61 = vld [vmem:[%s1929_s1 + $0xf8] sm:$0xf] }
  0x28   : > { %v1122_v59 = vor.u32 %v1354_v57, %v1121_v56  ;;  %v1126_v62 = vor.u32 %v1353_v58, %v1123_v60  ;;  %v1355_v63 = vld [vmem:[%s1929_s1 + $0x100] sm:$0xf0]  ;;  %v1109_v1 = vld [vmem:[%s1929_s1 + $0xd8] sm:$0xf]  ;;  %v1350_v3 = vld [vmem:[%s1929_s1 + $0xdc] sm:$0xf] }
  0x29   : > { %602 = vmatpush.bf16.msra.mxu3 %v1146_v41  ;;  %v1130_v0 = vor.u32 %v1355_v63, %v1129_v61  ;;  %v1351_v2 = vld [vmem:[%s1929_s1 + $0xe0] sm:$0xf0]  ;;  %v1111_v5 = vld [vmem:[%s1929_s1 + $0xe4] sm:$0xf0]  ;;  %v1117_v6 = vld [vmem:[%s1929_s1 + $0xe0] sm:$0xf] }
  0x2a   : > { %368 = vmatpush.bf16.msra.mxu0 %v970_v12  ;;  %v1110_v4 = vor.u32 %v1351_v2, %v1109_v1  ;;  %v1114_v7 = vor.u32 %v1350_v3, %v1111_v5  ;;  %v1352_v8 = vld [vmem:[%s1929_s1 + $0xe8] sm:$0xf0]  ;;  %v1097_v10 = vld [vmem:[%s1929_s1 + $0xc0] sm:$0xf]  ;;  %v1347_v12 = vld [vmem:[%s1929_s1 + $0xc4] sm:$0xf] }
  0x2b   : > { %382 = vmatpush.bf16.msra.mxu1 %v974_v15  ;;  %396 = vmatpush.bf16.msra.mxu2 %v978_v16  ;;  %v1118_v9 = vor.u32 %v1352_v8, %v1117_v6  ;;  %v1348_v11 = vld [vmem:[%s1929_s1 + $0xc8] sm:$0xf0]  ;;  %v1099_v14 = vld [vmem:[%s1929_s1 + $0xcc] sm:$0xf0]  ;;  %v1105_v15 = vld [vmem:[%s1929_s1 + $0xc8] sm:$0xf] }
  0x2c   : > { %v1098_v13 = vor.u32 %v1348_v11, %v1097_v10  ;;  %v1349_v16 = vld [vmem:[%s1929_s1 + $0xd0] sm:$0xf0]  ;;  %v1392_v21 = vld [vmem:[%s1929_s1 + $0x22c] sm:$0xf]  ;;  %v1311_v23 = vld [vmem:[%s1929_s1 + $0x234] sm:$0xf0] }
  0x2d   : > { %369 = vmatmul.bf16.vlgmr.msra.gmra.mxu0 %v200_v19  ;;  %603 = vmatpush.bf16.msra.mxu3 %v1134_v50  ;;  %v1393_v20 = vld [vmem:[%s1929_s1 + $0x230] sm:$0xf0]  ;;  %v1317_v24 = vld [vmem:[%s1929_s1 + $0x230] sm:$0xf]  ;;  %v1394_v25 = vld [vmem:[%s1929_s1 + $0x238] sm:$0xf0]  ;;  %v1314_v26 = vor.u32 %v1392_v21, %v1311_v23 }
  0x2e   : > { %613 = vmatpush.bf16.msrb.mxu0 %v1186_v17  ;;  %383 = vmatmul.bf16.vlgmr.msra.gmra.mxu1 %v200_v19  ;;  %v1102_v17 = vor.u32 %v1347_v12, %v1099_v14  ;;  %v1403_v42 = vld [vmem:[%s1930_s2] ss:$0 sm:$0xff]  ;;  %v1390_v56 = vld [vmem:[%s1929_s1 + $0x218] sm:$0xf0]  ;;  %v1389_v57 = vld [vmem:[%s1929_s1 + $0x214] sm:$0xf] }
  0x2f   : > { %627 = vmatpush.bf16.msrb.mxu1 %v1190_v18  ;;  %397 = vmatmul.bf16.vlgmr.msra.gmra.mxu2 %v200_v19  ;;  %v1106_v18 = vor.u32 %v1349_v16, %v1105_v15  ;;  %v1309_v19 = vld [vmem:[%s1929_s1 + $0x228] sm:$0xf]  ;;  %v1404_v47 = vld [vmem:[%s1931_s3] ss:$0 sm:$0xff]  ;;  %v1305_v60 = vld [vmem:[%s1929_s1 + $0x218] sm:$0xf] }
  0x30   : > { %v1310_v22 = vor.u32 %v1393_v20, %v1309_v19  ;;  %v1391_v61 = vld [vmem:[%s1929_s1 + $0x220] sm:$0xf0]  ;;  %v1386_v2 = vld [vmem:[%s1929_s1 + $0x1fc] sm:$0xf]  ;;  %v1293_v5 = vld [vmem:[%s1929_s1 + $0x200] sm:$0xf] }
  0x31   : > { %604 = vmatpush.bf16.msra.mxu3 %v1122_v59  ;;  %v1299_v59 = vld [vmem:[%s1929_s1 + $0x21c] sm:$0xf0]  ;;  %v1306_v63 = vor.u32 %v1391_v61, %v1305_v60  ;;  %v1387_v1 = vld [vmem:[%s1929_s1 + $0x200] sm:$0xf0]  ;;  %v1388_v6 = vld [vmem:[%s1929_s1 + $0x208] sm:$0xf0] }
  0x32   : > { %614 = vmatpush.bf16.msrb.mxu0 %v1174_v27  ;;  %v1318_v27 = vor.u32 %v1394_v25, %v1317_v24  ;;  %835 = vmatpush.bf16.msrb.mxu2 %v1310_v22  ;;  %v1294_v8 = vor.u32 %v1388_v6, %v1293_v5  ;;  %v1384_v10 = vld [vmem:[%s1929_s1 + $0x1e8] sm:$0xf0]  ;;  %v1383_v11 = vld [vmem:[%s1929_s1 + $0x1e4] sm:$0xf]  ;;  %v1281_v14 = vld [vmem:[%s1929_s1 + $0x1e8] sm:$0xf] }
  0x33   : > { %628 = vmatpush.bf16.msrb.mxu1 %v1178_v28  ;;  %v1385_v15 = vld [vmem:[%s1929_s1 + $0x1f0] sm:$0xf0]  ;;  %v1380_v20 = vld [vmem:[%s1929_s1 + $0x1cc] sm:$0xf]  ;;  %v1263_v22 = vld [vmem:[%s1929_s1 + $0x1d4] sm:$0xf0] }
  0x34   : > { %v1381_v19 = vld [vmem:[%s1929_s1 + $0x1d0] sm:$0xf0]  ;;  %v1269_v23 = vld [vmem:[%s1929_s1 + $0x1d0] sm:$0xf]  ;;  %v1266_v24 = vor.u32 %v1380_v20, %v1263_v22  ;;  %v1382_v25 = vld [vmem:[%s1929_s1 + $0x1d8] sm:$0xf0] }
  0x35   : > { %605 = vmatpush.bf16.msra.mxu3 %v1110_v4  ;;  %v1287_v4 = vld [vmem:[%s1929_s1 + $0x204] sm:$0xf0] }
  0x36   : > { %615 = vmatpush.bf16.msrb.mxu0 %v1162_v36 }
  0x37   : > { %629 = vmatpush.bf16.msrb.mxu1 %v1166_v37 }
  0x39   : > { %606 = vmatpush.bf16.msra.mxu3 %v1098_v13  ;;  %v1275_v13 = vld [vmem:[%s1929_s1 + $0x1ec] sm:$0xf0] }
  0x3a   : > { %616 = vmatpush.bf16.msrb.mxu0 %v1150_v45  ;;  %v1278_v16 = vor.u32 %v1383_v11, %v1275_v13 }
  0x3b   : > { %630 = vmatpush.bf16.msrb.mxu1 %v1154_v46 }
  0x3d   : > { %849 = vmatpush.bf16.msrb.mxu3 %v1314_v26  ;;  %v1270_v26 = vor.u32 %v1382_v25, %v1269_v23 }
  0x3e   : > { %617 = vmatpush.bf16.msrb.mxu0 %v1138_v54 }
  0x3f   : > { %631 = vmatpush.bf16.msrb.mxu1 %v1142_v55  ;;  %v1297_v55 = vld [vmem:[%s1929_s1 + $0x210] sm:$0xf] }
  0x40   : > { %v1298_v58 = vor.u32 %v1390_v56, %v1297_v55 }
  0x42   : > { %618 = vmatpush.bf16.msrb.mxu0 %v1126_v62  ;;  %v1302_v62 = vor.u32 %v1389_v57, %v1299_v59  ;;  %836 = vmatpush.bf16.msrb.mxu2 %v1298_v58 }
  0x43   : > { %632 = vmatpush.bf16.msrb.mxu1 %v1130_v0  ;;  %v1285_v0 = vld [vmem:[%s1929_s1 + $0x1f8] sm:$0xf] }
  0x44   : > { %850 = vmatpush.bf16.msrb.mxu3 %v1302_v62  ;;  %v1286_v3 = vor.u32 %v1387_v1, %v1285_v0  ;;  %v1405_v1 = vld [vmem:[%s1930_s2 + $0x1] ss:$0 sm:$0xff] }
  0x46   : > { %619 = vmatpush.bf16.msrb.mxu0 %v1114_v7  ;;  %v1290_v7 = vor.u32 %v1386_v2, %v1287_v4  ;;  %837 = vmatpush.bf16.msrb.mxu2 %v1286_v3 }
  0x47   : > { %633 = vmatpush.bf16.msrb.mxu1 %v1118_v9  ;;  %v1273_v9 = vld [vmem:[%s1929_s1 + $0x1e0] sm:$0xf] }
  0x48   : > { %851 = vmatpush.bf16.msrb.mxu3 %v1290_v7  ;;  %v1274_v12 = vor.u32 %v1384_v10, %v1273_v9 }
  0x4a   : > { %620 = vmatpush.bf16.msrb.mxu0 %v1102_v17  ;;  %v1282_v17 = vor.u32 %v1385_v15, %v1281_v14  ;;  %838 = vmatpush.bf16.msrb.mxu2 %v1274_v12 }
  0x4b   : > { %634 = vmatpush.bf16.msrb.mxu1 %v1106_v18  ;;  %v1261_v18 = vld [vmem:[%s1929_s1 + $0x1c8] sm:$0xf] }
  0x4c   : > { %852 = vmatpush.bf16.msrb.mxu3 %v1278_v16  ;;  %v1262_v21 = vor.u32 %v1381_v19, %v1261_v18 }
  0x4e   : > { %863 = vmatpush.bf16.msra.mxu0 %v1318_v27  ;;  %839 = vmatpush.bf16.msrb.mxu2 %v1262_v21  ;;  %v1249_v27 = vld [vmem:[%s1929_s1 + $0x1b0] sm:$0xf] }
  0x50   : > { %853 = vmatpush.bf16.msrb.mxu3 %v1266_v24 }
  0x52   : > { %864 = vmatpush.bf16.msra.mxu0 %v1306_v63 }
  0x56   : > { %865 = vmatpush.bf16.msra.mxu0 %v1294_v8  ;;  %v1406_v8 = vld [vmem:[%s1931_s3 + $0x1] ss:$0 sm:$0xff] }
  0x5a   : > { %866 = vmatpush.bf16.msra.mxu0 %v1282_v17 }
  0x5e   : > { %867 = vmatpush.bf16.msra.mxu0 %v1270_v26  ;;  %v1407_v26 = vld [vmem:[%s1930_s2 + $0x2] ss:$0 sm:$0xff] }
  0xaa   : > { %v370_v28 = vpop.f32.mrf.mxu0 }
  0xab   : > { %v384_v29 = vpop.f32.mrf.mxu1  ;;  %v406_v32 = vrot.slane %v370_v28, 7  ;;  %v1378_v28 = vld [vmem:[%s1929_s1 + $0x1b8] sm:$0xf0] }
  0xad   : > { %v411_v34 = vsel %vm405_vm0, 0.0, %v406_v32 }
  0xae   : > { %v421_v40 = vadd.f32 %v411_v34, %v384_v29  ;;  %v1377_v29 = vld [vmem:[%s1929_s1 + $0x1b4] sm:$0xf] }
  0xb2   : > { %v398_v30 = vpop.f32.mrf.mxu2  ;;  %v372_v31 = vpop.f32.mrf.mxu0 }
  0xb3   : > { %v407_v33 = vrot.slane %v372_v31, 7  ;;  %v415_v37 = vrot.slane %v398_v30, 1  ;;  %v386_v38 = vpop.f32.mrf.mxu1  ;;  %v1250_v30 = vor.u32 %v1378_v28, %v1249_v27  ;;  %v1251_v31 = vld [vmem:[%s1929_s1 + $0x1bc] sm:$0xf0] }
  0xb4   : > { %v1254_v34 = vor.u32 %v1377_v29, %v1251_v31 }
  0xb5   : > { %v408_v35 = vsel %vm405_vm0, %v406_v32, %v407_v33  ;;  %v1257_v32 = vld [vmem:[%s1929_s1 + $0x1b8] sm:$0xf]  ;;  %v1379_v33 = vld [vmem:[%s1929_s1 + $0x1c0] sm:$0xf0]  ;;  %840 = vmatpush.bf16.msrb.mxu2 %v1250_v30 }
  0xb6   : > { %v422_v41 = vadd.f32 %v408_v35, %v386_v38  ;;  %v1258_v35 = vor.u32 %v1379_v33, %v1257_v32  ;;  %854 = vmatpush.bf16.msrb.mxu3 %v1254_v34  ;;  %v1374_v38 = vld [vmem:[%s1929_s1 + $0x19c] sm:$0xf] }
  0xb8   : > { %868 = vmatpush.bf16.msra.mxu0 %v1258_v35 }
  0xba   : > { %v400_v36 = vpop.f32.mrf.mxu2 }
  0xbb   : > { %v416_v39 = vrot.slane %v400_v36, 1  ;;  %v1237_v36 = vld [vmem:[%s1929_s1 + $0x198] sm:$0xf] }
  0xbd   : > { %v417_v43 = vsel %vm414_vm1, %v415_v37, %v416_v39  ;;  %v420_v44 = vsel %vm414_vm1, %v416_v39, 0.0  ;;  %v1375_v37 = vld [vmem:[%s1929_s1 + $0x1a0] sm:$0xf0] }
  0xbe   : > { %v423_v45 = vadd.f32 %v421_v40, %v417_v43  ;;  %v424_v46 = vadd.f32 %v422_v41, %v420_v44  ;;  %v1238_v39 = vor.u32 %v1375_v37, %v1237_v36  ;;  %v1239_v40 = vld [vmem:[%s1929_s1 + $0x1a4] sm:$0xf0]  ;;  %v1245_v41 = vld [vmem:[%s1929_s1 + $0x1a0] sm:$0xf] }
  0xbf   : > { %v1242_v43 = vor.u32 %v1374_v38, %v1239_v40 }
  0xc0   : > { %v427_v48 = vadd.f32 %v1403_v42, %v423_v45  ;;  %v428_v49 = vadd.f32 %v1403_v42, %v424_v46  ;;  %v1376_v42 = vld [vmem:[%s1929_s1 + $0x1a8] sm:$0xf0]  ;;  %v1225_v45 = vld [vmem:[%s1929_s1 + $0x180] sm:$0xf]  ;;  %841 = vmatpush.bf16.msrb.mxu2 %v1238_v39 }
  0xc1   : > { %v1246_v44 = vor.u32 %v1376_v42, %v1245_v41  ;;  %v1372_v46 = vld [vmem:[%s1929_s1 + $0x188] sm:$0xf0]  ;;  %855 = vmatpush.bf16.msrb.mxu3 %v1242_v43 }
  0xc2   : > { %vm429_vm2 = vcmp.gt.f32.partialorder %v427_v48, 0.0  ;;  %vm430_vm3 = vcmp.gt.f32.partialorder %v428_v49, 0.0  ;;  %v433_v50 = vmul.f32 %v1404_v47, %v427_v48  ;;  %v434_v51 = vmul.f32 %v1404_v47, %v428_v49  ;;  %v1371_v47 = vld [vmem:[%s1929_s1 + $0x184] sm:$0xf] }
  0xc3   : > { %869 = vmatpush.bf16.msra.mxu0 %v1246_v44 }
  0xc4   : > { %v435_v52 = vsel %vm429_vm2, %v427_v48, %v433_v50  ;;  %v436_v53 = vsel %vm430_vm3, %v428_v49, %v434_v51  ;;  %v1226_v48 = vor.u32 %v1372_v46, %v1225_v45  ;;  %v1227_v49 = vld [vmem:[%s1929_s1 + $0x18c] sm:$0xf0]  ;;  %v1233_v50 = vld [vmem:[%s1929_s1 + $0x188] sm:$0xf]  ;;  %v1373_v51 = vld [vmem:[%s1929_s1 + $0x190] sm:$0xf0] }
  0xc5   : > { %v437_v54 = vpack.c.bf16 %v436_v53, %v435_v52  ;;  %v1230_v52 = vor.u32 %v1371_v47, %v1227_v49  ;;  %v1234_v53 = vor.u32 %v1373_v51, %v1233_v50 }
  0xc6   : > { %842 = vmatpush.bf16.msrb.mxu2 %v1226_v48 }
  0xc7   : > { %607 = vmatmul.bf16.vlgmr.msra.gmra.mxu3 %v437_v54  ;;  %621 = vmatmul.bf16.vlgmr.msrb.gmra.mxu0 %v437_v54 }
  0xc8   : > { %635 = vmatmul.bf16.vlgmr.msrb.gmra.mxu1 %v437_v54  ;;  %856 = vmatpush.bf16.msrb.mxu3 %v1230_v52 }
  0xc9   : > { %870 = vmatpush.bf16.msra.mxu0 %v1234_v53 }
 0x144   : > { %v622_v56 = vpop.f32.mrf.mxu0 }
 0x145   : > { %v636_v54 = vpop.f32.mrf.mxu1 }
 0x146   : > { %v651_v60 = vrot.slane %v636_v54, 1 }
 0x14a   : > { %v608_v55 = vpop.f32.mrf.mxu3 }
 0x14b   : > { %v643_v57 = vrot.slane %v608_v55, 7 }
 0x14c   : > { %v624_v4 = vpop.f32.mrf.mxu0 }
 0x14d   : > { %v648_v58 = vsel %vm405_vm0, 0.0, %v643_v57  ;;  %v638_v59 = vpop.f32.mrf.mxu1 }
 0x14e   : > { %v657_v61 = vadd.f32 %v648_v58, %v622_v56  ;;  %v652_v62 = vrot.slane %v638_v59, 1 }
 0x150   : > { %v653_v63 = vsel %vm414_vm1, %v651_v60, %v652_v62  ;;  %v656_v9 = vsel %vm414_vm1, %v652_v62, 0.0 }
 0x151   : > { %v659_v0 = vadd.f32 %v657_v61, %v653_v63 }
 0x152   : > { %v610_v2 = vpop.f32.mrf.mxu3 }
 0x153   : > { %v644_v3 = vrot.slane %v610_v2, 7  ;;  %v663_v6 = vadd.f32 %v1405_v1, %v659_v0 }
 0x155   : > { %v645_v5 = vsel %vm405_vm0, %v643_v57, %v644_v3  ;;  %v669_v12 = vmul.f32 %v1406_v8, %v663_v6  ;;  %vm665_vm4 = vcmp.gt.f32.partialorder %v663_v6, 0.0 }
 0x156   : > { %v658_v7 = vadd.f32 %v645_v5, %v624_v4 }
 0x157   : > { %v671_v14 = vsel %vm665_vm4, %v663_v6, %v669_v12 }
 0x158   : > { %v660_v10 = vadd.f32 %v658_v7, %v656_v9 }
 0x15a   : > { %v664_v11 = vadd.f32 %v1405_v1, %v660_v10 }
 0x15c   : > { %vm666_vm5 = vcmp.gt.f32.partialorder %v664_v11, 0.0  ;;  %v670_v13 = vmul.f32 %v1406_v8, %v664_v11 }
 0x15e   : > { %v672_v15 = vsel %vm666_vm5, %v664_v11, %v670_v13 }
 0x15f   : > { %v673_v16 = vpack.c.bf16 %v672_v15, %v671_v14 }
 0x161   : > { %843 = vmatmul.bf16.vlgmr.msrb.gmra.mxu2 %v673_v16  ;;  %857 = vmatmul.bf16.vlgmr.msrb.gmra.mxu3 %v673_v16 }
 0x162   : > { %871 = vmatmul.bf16.vlgmr.msra.gmra.mxu0 %v673_v16 }
 0x1df   : > { %v872_v17 = vpop.f32.mrf.mxu0 }
 0x1e0   : > { %v887_v23 = vrot.slane %v872_v17, 1 }
 0x1e4   : > { %v844_v18 = vpop.f32.mrf.mxu2  ;;  %v858_v20 = vpop.f32.mrf.mxu3 }
 0x1e5   : > { %v879_v19 = vrot.slane %v844_v18, 7 }
 0x1e7   : > { %v884_v21 = vsel %vm405_vm0, 0.0, %v879_v19  ;;  %v874_v22 = vpop.f32.mrf.mxu0 }
 0x1e8   : > { %v893_v24 = vadd.f32 %v884_v21, %v858_v20  ;;  %v888_v25 = vrot.slane %v874_v22, 1 }
 0x1ea   : > { %v889_v27 = vsel %vm414_vm1, %v887_v23, %v888_v25  ;;  %v892_v35 = vsel %vm414_vm1, %v888_v25, 0.0 }
 0x1eb   : > { %v895_v28 = vadd.f32 %v893_v24, %v889_v27 }
 0x1ec   : > { %v846_v29 = vpop.f32.mrf.mxu2  ;;  %v860_v32 = vpop.f32.mrf.mxu3 }
 0x1ed   : > { %v880_v30 = vrot.slane %v846_v29, 7  ;;  %v899_v31 = vadd.f32 %v1407_v26, %v895_v28 }
 0x1ef   : > { %v881_v33 = vsel %vm405_vm0, %v879_v19, %v880_v30  ;;  %901 = vst [vmem:[%s197_s18] sm:$0xff] %v899_v31 }
 0x1f0   : > { %v894_v34 = vadd.f32 %v881_v33, %v860_v32 }
 0x1f2   : > { %v896_v36 = vadd.f32 %v894_v34, %v892_v35 }
 0x1f4   : > { %v900_v37 = vadd.f32 %v1407_v26, %v896_v36 }
 0x1f6   : > { %902 = vst [vmem:[%s197_s18 + $0x8] sm:$0xff] %v900_v37 }
 0x1f7 PF: > { %s14_s15 = sadd.s32 1, %s1414_s15  }
 0x1f8   : > { %p11_p4 = scmp.ge.s32.totalorder %s14_s15, 4  }
 0x1fa   :  { %13 = sbr.rel (!%p11_p4) target bundleno = 1 (0x1), region = 68 }

</bundles_post_ra>
